<compile_context>
chip_gen: v6e
topology: v6e:2x2x1
jax: 0.10.0
libtpu: 0.0.40
codegen_flags: <defaults>
</compile_context>

<pallas_src>
import math

import jax
import jax.numpy as jnp
from jax import lax
from jax.experimental import pallas as pl
from jax.experimental.pallas import tpu as pltpu


def _make_kernel(L, S, D, H, n_pass, use_min_side, fuse_qkv):
    d = D // H
    n_cols = H * L

    def kernel(x_ref, w_ref, b_ref, o_ref, slab_ref):
        # x_ref: (L+2S, D) packed [xq_b; xk_b; xv_b] (leading batch dim squeezed
        # by the BlockSpec), w_ref: (D, 3D) = [Wq|Wk|Wv], b_ref: (1, 3D).
        x = x_ref[...]
        w = w_ref[...]
        b = b_ref[...]

        # --- q/k/v projections -------------------------------------------------
        if fuse_qkv:
            # one MXU call; fine for small D (3x-FLOP waste is negligible).
            proj = jnp.dot(x, w, preferred_element_type=jnp.float32) + b
            q_all = proj[:L, :D]                         # (L, D)
            k_all = proj[L:L + S, D:2 * D]               # (S, D)
            v_all = proj[L + S:, 2 * D:]                 # (S, D)
        else:
            # production D (multiple of 128): three aligned matmuls, no waste.
            q_all = jnp.dot(x[:L, :], w[:, :D],
                            preferred_element_type=jnp.float32) + b[:, :D]
            k_all = jnp.dot(x[L:L + S, :], w[:, D:2 * D],
                            preferred_element_type=jnp.float32) + b[:, D:2 * D]
            v_all = jnp.dot(x[L + S:, :], w[:, 2 * D:],
                            preferred_element_type=jnp.float32) + b[:, 2 * D:]

        # --- scores: one batched matmul over the merged head dim ---------------
        # scores3[h, s, l] = sum_d k[s, h, d] * q[l, h, d]
        q_stack = jnp.stack([q_all[:, h * d:(h + 1) * d] for h in range(H)],
                            axis=0)                      # (H, L, d)
        k_stack = jnp.stack([k_all[:, h * d:(h + 1) * d] for h in range(H)],
                            axis=0)                      # (H, S, d)
        scores3 = jnp.einsum('hsd,hld->hsl', k_stack, q_stack,
                             preferred_element_type=jnp.float32)   # (H, S, L)

        # pack lane-dense into VMEM scratch slab: slab[s, h*L + l]
        for h in range(H):
            slab_ref[:, h * L:(h + 1) * L] = scores3[h]
        scores_t = slab_ref[...]                         # (S, H*L)

        # --- U-th largest per column via iterated masked extremum ---------------
        # min side when S-U+1 < U (U-th largest == (S-U+1)-th smallest).
        if use_min_side:
            def body(_, th):
                masked = jnp.where(scores_t > th, scores_t, jnp.inf)
                return jnp.min(masked, axis=0, keepdims=True)
            init = jnp.full((1, n_cols), -jnp.inf, jnp.float32)
        else:
            def body(_, th):
                masked = jnp.where(scores_t < th, scores_t, -jnp.inf)
                return jnp.max(masked, axis=0, keepdims=True)
            init = jnp.full((1, n_cols), jnp.inf, jnp.float32)
        thresh = lax.fori_loop(0, n_pass, body, init, unroll=True)

        # keep top-U, zero the rest; softmax over the full row (zeros included,
        # matching torch scatter-into-zeros + softmax).
        sparse = jnp.where(scores_t >= thresh, scores_t, 0.0)
        m = jnp.max(sparse, axis=0, keepdims=True)
        e = jnp.exp(sparse - m)
        inv = pl.reciprocal(jnp.sum(e, axis=0, keepdims=True), approx=True)
        attn_t = e * inv                                 # (S, H*L)

        # --- attention @ V: trans-LHS contraction (no slab transpose) ----------
        outs = []
        for h in range(H):
            a_h = attn_t[:, h * L:(h + 1) * L]           # (S, L)
            v_h = v_all[:, h * d:(h + 1) * d]            # (S, d)
            outs.append(lax.dot_general(
                a_h, v_h, (((0,), (0,)), ((), ())),
                preferred_element_type=jnp.float32))     # (L, d)

        # single store of the whole (L, D) block.
        o_ref[...] = jnp.concatenate(outs, axis=1).astype(o_ref.dtype)

    return kernel


def prob_sparse_attention(xq, xk, xv, Wq, bq, Wk, bk, Wv, bv, *,
                          n_heads, factor=5):
    B, L, D = xq.shape
    S = xk.shape[1]
    H = n_heads
    assert D % H == 0
    U = int(factor * math.log(L))
    assert 1 <= U <= S, "factor*log(L) must select between 1 and S keys"

    # One-time packing in the wrapper (no in-kernel concat / reshape).
    x_packed = jnp.concatenate([xq, xk, xv], axis=1)                 # (B, L+2S, D)
    w_cat = jnp.concatenate([Wq, Wk, Wv], axis=1)                    # (D, 3D)
    b_cat = jnp.concatenate([bq.reshape(1, D), bk.reshape(1, D),
                             bv.reshape(1, D)], axis=1)              # (1, 3D)

    n_pass = min(U, S - U + 1)
    use_min_side = (S - U + 1) <= U
    fuse_qkv = D <= 128     # fused projection only while the 3x waste is negligible

    kernel = _make_kernel(L, S, D, H, n_pass, use_min_side, fuse_qkv)

    return pl.pallas_call(
        kernel,
        out_shape=jax.ShapeDtypeStruct((B, L, D), xq.dtype),
        grid_spec=pltpu.PrefetchScalarGridSpec(
            num_scalar_prefetch=0,
            grid=(B,),                                   # one batch element per step
            in_specs=[
                pl.BlockSpec((None, L + 2 * S, D), lambda i: (i, 0, 0)),
                pl.BlockSpec((D, 3 * D), lambda i: (0, 0)),
                pl.BlockSpec((1, 3 * D), lambda i: (0, 0)),
            ],
            out_specs=pl.BlockSpec((None, L, D), lambda i: (i, 0, 0)),
            scratch_shapes=[pltpu.VMEM((S, H * L), jnp.float32)],
        ),
        compiler_params=pltpu.CompilerParams(
            dimension_semantics=("parallel",)),
    )(x_packed, w_cat, b_cat)


def reference(xq, xk, xv, Wq, bq, Wk, bk, Wv, bv, *, n_heads, factor=5):
    """Pure-JAX reference mirroring the PyTorch forward (eval mode)."""
    B, L, D = xq.shape
    S = xk.shape[1]
    H = n_heads
    d = D // H
    U = int(factor * math.log(L))
    q = (xq @ Wq + bq).reshape(B, L, H, d)
    k = (xk @ Wk + bk).reshape(B, S, H, d)
    v = (xv @ Wv + bv).reshape(B, S, H, d)
    scores = jnp.einsum('blhd,bshd->bhls', q, k)
    kth = lax.top_k(scores, U)[0][..., -1:]
    sparse = jnp.where(scores >= kth, scores, 0.0)
    attn = jax.nn.softmax(sparse, axis=-1)
    return jnp.einsum('bhls,bshd->blhd', attn, v).reshape(B, L, D)


if __name__ == "__main__":
    B, L, S, D, H, factor = 2, 16, 16, 64, 4, 5   # d_model=64, head_dim=16, U=13

    key = jax.random.PRNGKey(0)
    ks = jax.random.split(key, 9)
    xq = jax.random.normal(ks[0], (B, L, D), jnp.float32)
    xk = jax.random.normal(ks[1], (B, S, D), jnp.float32)
    xv = jax.random.normal(ks[2], (B, S, D), jnp.float32)
    # Deterministic synthetic parameters (nn.Linear(d_model, d_model) x3).
    Wq = 0.1 * jax.random.normal(ks[3], (D, D), jnp.float32)
    Wk = 0.1 * jax.random.normal(ks[4], (D, D), jnp.float32)
    Wv = 0.1 * jax.random.normal(ks[5], (D, D), jnp.float32)
    bq = 0.1 * jax.random.normal(ks[6], (1, D), jnp.float32)
    bk = 0.1 * jax.random.normal(ks[7], (1, D), jnp.float32)
    bv = 0.1 * jax.random.normal(ks[8], (1, D), jnp.float32)

    out = prob_sparse_attention(xq, xk, xv, Wq, bq, Wk, bk, Wv, bv,
                                n_heads=H, factor=factor)
    out = jax.block_until_ready(out)

    ref = reference(xq, xk, xv, Wq, bq, Wk, bk, Wv, bv, n_heads=H, factor=factor)
    assert out.shape == (B, L, D)
    # tolerance accommodates the approximate EUP reciprocal in the softmax
    if not jnp.allclose(out, ref, rtol=1e-2, atol=1e-2):
        raise SystemExit("kernel/reference mismatch: max abs err = "
                         f"{float(jnp.max(jnp.abs(out - ref)))}")
    print("KERNEL_OK")
</pallas_src>

<mosaic_0001>
module attributes {stable_mosaic.version = 11 : i64} {
  func.func @kernel(%arg0: i32, %arg1: memref<1x48x64xf32, #tpu.memory_space<vmem>>, %arg2: memref<64x192xf32, #tpu.memory_space<vmem>>, %arg3: memref<1x192xf32, #tpu.memory_space<vmem>>, %arg4: memref<1x16x64xf32, #tpu.memory_space<vmem>>, %arg5: memref<16x64xf32, #tpu.memory_space<vmem>>) attributes {dimension_semantics = [#tpu.dimension_semantics<parallel>], iteration_bounds = array<i64: 2>, scalar_prefetch = 0 : i64, scratch_operands = 1 : i64, tpu.core_type = #tpu.core_type<tc>, window_params = [{transform_indices = @transform_0, window_bounds = array<i64: 1, 48, 64>}, {pipeline_mode = #tpu.pipeline_mode<synchronous>, transform_indices = @transform_1, window_bounds = array<i64: 64, 192>}, {pipeline_mode = #tpu.pipeline_mode<synchronous>, transform_indices = @transform_2, window_bounds = array<i64: 1, 192>}, {transform_indices = @transform_3, window_bounds = array<i64: 1, 16, 64>}]} {
    %c0 = arith.constant 0 : index
    %c0_0 = arith.constant 0 : index
    %c0_1 = arith.constant 0 : index
    %0 = vector.load %arg1[%c0, %c0_0, %c0_1] : memref<1x48x64xf32, #tpu.memory_space<vmem>>, vector<1x48x64xf32>
    %1 = vector.shape_cast %0 : vector<1x48x64xf32> to vector<48x64xf32>
    %c0_2 = arith.constant 0 : index
    %c0_3 = arith.constant 0 : index
    %2 = vector.load %arg2[%c0_2, %c0_3] : memref<64x192xf32, #tpu.memory_space<vmem>>, vector<64x192xf32>
    %c0_4 = arith.constant 0 : index
    %c0_5 = arith.constant 0 : index
    %3 = vector.load %arg3[%c0_4, %c0_5] : memref<1x192xf32, #tpu.memory_space<vmem>>, vector<1x192xf32>
    %cst = arith.constant dense<0.000000e+00> : vector<48x192xf32>
    %4 = tpu.matmul %1, %2, %cst {dimension_numbers = #tpu.dot_dimension_numbers<[1], [0], [0], [1], [0, 0, 1, 1], [], []>} : vector<48x64xf32>, vector<64x192xf32>, vector<48x192xf32> -> vector<48x192xf32>
    %5 = vector.broadcast %3 : vector<1x192xf32> to vector<48x192xf32>
    %6 = arith.addf %4, %5 : vector<48x192xf32>
    %7 = vector.extract_strided_slice %6 {offsets = [0, 0], sizes = [16, 64], strides = [1, 1]} : vector<48x192xf32> to vector<16x64xf32>
    %8 = vector.extract_strided_slice %6 {offsets = [16, 64], sizes = [16, 64], strides = [1, 1]} : vector<48x192xf32> to vector<16x64xf32>
    %9 = vector.extract_strided_slice %6 {offsets = [32, 128], sizes = [16, 64], strides = [1, 1]} : vector<48x192xf32> to vector<16x64xf32>
    %10 = vector.extract_strided_slice %7 {offsets = [0, 0], sizes = [16, 16], strides = [1, 1]} : vector<16x64xf32> to vector<16x16xf32>
    %11 = vector.extract_strided_slice %7 {offsets = [0, 16], sizes = [16, 16], strides = [1, 1]} : vector<16x64xf32> to vector<16x16xf32>
    %12 = vector.extract_strided_slice %7 {offsets = [0, 32], sizes = [16, 16], strides = [1, 1]} : vector<16x64xf32> to vector<16x16xf32>
    %13 = vector.extract_strided_slice %7 {offsets = [0, 48], sizes = [16, 16], strides = [1, 1]} : vector<16x64xf32> to vector<16x16xf32>
    %14 = vector.shape_cast %10 : vector<16x16xf32> to vector<1x16x16xf32>
    %15 = vector.shape_cast %11 : vector<16x16xf32> to vector<1x16x16xf32>
    %16 = vector.shape_cast %12 : vector<16x16xf32> to vector<1x16x16xf32>
    %17 = vector.shape_cast %13 : vector<16x16xf32> to vector<1x16x16xf32>
    %18 = tpu.concatenate %14, %15, %16, %17 in 0 : vector<1x16x16xf32>, vector<1x16x16xf32>, vector<1x16x16xf32>, vector<1x16x16xf32> -> vector<4x16x16xf32>
    %19 = vector.extract_strided_slice %8 {offsets = [0, 0], sizes = [16, 16], strides = [1, 1]} : vector<16x64xf32> to vector<16x16xf32>
    %20 = vector.extract_strided_slice %8 {offsets = [0, 16], sizes = [16, 16], strides = [1, 1]} : vector<16x64xf32> to vector<16x16xf32>
    %21 = vector.extract_strided_slice %8 {offsets = [0, 32], sizes = [16, 16], strides = [1, 1]} : vector<16x64xf32> to vector<16x16xf32>
    %22 = vector.extract_strided_slice %8 {offsets = [0, 48], sizes = [16, 16], strides = [1, 1]} : vector<16x64xf32> to vector<16x16xf32>
    %23 = vector.shape_cast %19 : vector<16x16xf32> to vector<1x16x16xf32>
    %24 = vector.shape_cast %20 : vector<16x16xf32> to vector<1x16x16xf32>
    %25 = vector.shape_cast %21 : vector<16x16xf32> to vector<1x16x16xf32>
    %26 = vector.shape_cast %22 : vector<16x16xf32> to vector<1x16x16xf32>
    %27 = tpu.concatenate %23, %24, %25, %26 in 0 : vector<1x16x16xf32>, vector<1x16x16xf32>, vector<1x16x16xf32>, vector<1x16x16xf32> -> vector<4x16x16xf32>
    "tpu.trace_start"() <{level = 10 : i32, message = "hsd,hld->hsl"}> : () -> ()
    %cst_6 = arith.constant dense<0.000000e+00> : vector<4x16x16xf32>
    %28 = tpu.matmul %27, %18, %cst_6 {dimension_numbers = #tpu.dot_dimension_numbers<[2], [2], [1], [1], [0, 0, 0, 1, 1, 1], [0], [0]>} : vector<4x16x16xf32>, vector<4x16x16xf32>, vector<4x16x16xf32> -> vector<4x16x16xf32>
    "tpu.trace_stop"() : () -> ()
    %29 = vector.extract_strided_slice %28 {offsets = [0, 0, 0], sizes = [1, 16, 16], strides = [1, 1, 1]} : vector<4x16x16xf32> to vector<1x16x16xf32>
    %30 = vector.shape_cast %29 : vector<1x16x16xf32> to vector<16x16xf32>
    %c0_7 = arith.constant 0 : index
    %c0_8 = arith.constant 0 : index
    %31 = vector.load %arg5[%c0_7, %c0_8] : memref<16x64xf32, #tpu.memory_space<vmem>>, vector<16x16xf32>
    tpu.vector_store %arg5[%c0_7, %c0_8], %30 {strides = array<i32>} : memref<16x64xf32, #tpu.memory_space<vmem>>, vector<16x16xf32>,
    %32 = vector.extract_strided_slice %28 {offsets = [1, 0, 0], sizes = [1, 16, 16], strides = [1, 1, 1]} : vector<4x16x16xf32> to vector<1x16x16xf32>
    %33 = vector.shape_cast %32 : vector<1x16x16xf32> to vector<16x16xf32>
    %c0_9 = arith.constant 0 : index
    %c16 = arith.constant 16 : index
    %34 = vector.load %arg5[%c0_9, %c16] : memref<16x64xf32, #tpu.memory_space<vmem>>, vector<16x16xf32>
    tpu.vector_store %arg5[%c0_9, %c16], %33 {strides = array<i32>} : memref<16x64xf32, #tpu.memory_space<vmem>>, vector<16x16xf32>,
    %35 = vector.extract_strided_slice %28 {offsets = [2, 0, 0], sizes = [1, 16, 16], strides = [1, 1, 1]} : vector<4x16x16xf32> to vector<1x16x16xf32>
    %36 = vector.shape_cast %35 : vector<1x16x16xf32> to vector<16x16xf32>
    %c0_10 = arith.constant 0 : index
    %c32 = arith.constant 32 : index
    %37 = vector.load %arg5[%c0_10, %c32] : memref<16x64xf32, #tpu.memory_space<vmem>>, vector<16x16xf32>
    tpu.vector_store %arg5[%c0_10, %c32], %36 {strides = array<i32>} : memref<16x64xf32, #tpu.memory_space<vmem>>, vector<16x16xf32>,
    %38 = vector.extract_strided_slice %28 {offsets = [3, 0, 0], sizes = [1, 16, 16], strides = [1, 1, 1]} : vector<4x16x16xf32> to vector<1x16x16xf32>
    %39 = vector.shape_cast %38 : vector<1x16x16xf32> to vector<16x16xf32>
    %c0_11 = arith.constant 0 : index
    %c48 = arith.constant 48 : index
    %40 = vector.load %arg5[%c0_11, %c48] : memref<16x64xf32, #tpu.memory_space<vmem>>, vector<16x16xf32>
    tpu.vector_store %arg5[%c0_11, %c48], %39 {strides = array<i32>} : memref<16x64xf32, #tpu.memory_space<vmem>>, vector<16x16xf32>,
    %c0_12 = arith.constant 0 : index
    %c0_13 = arith.constant 0 : index
    %41 = vector.load %arg5[%c0_12, %c0_13] : memref<16x64xf32, #tpu.memory_space<vmem>>, vector<16x64xf32>
    %cst_14 = arith.constant 0xFF800000 : f32
    %42 = vector.broadcast %cst_14 : f32 to vector<1x64xf32>
    %c0_i32 = arith.constant 0 : i32
    %43 = vector.broadcast %42 : vector<1x64xf32> to vector<16x64xf32>
    %44 = arith.cmpf ogt, %41, %43 : vector<16x64xf32>
    %cst_15 = arith.constant 0x7F800000 : f32
    %45 = vector.broadcast %cst_15 : f32 to vector<16x64xf32>
    %46 = arith.select %44, %41, %45 : vector<16x64xi1>, vector<16x64xf32>
    %cst_16 = arith.constant dense<0x7F800000> : vector<64xf32>
    %47 = vector.multi_reduction <minimumf>, %46, %cst_16 [0] : vector<16x64xf32> to vector<64xf32>
    %48 = vector.shape_cast %47 : vector<64xf32> to vector<1x64xf32>
    %c1_i32 = arith.constant 1 : i32
    %49 = vector.broadcast %48 : vector<1x64xf32> to vector<16x64xf32>
    %50 = arith.cmpf ogt, %41, %49 : vector<16x64xf32>
    %cst_17 = arith.constant 0x7F800000 : f32
    %51 = vector.broadcast %cst_17 : f32 to vector<16x64xf32>
    %52 = arith.select %50, %41, %51 : vector<16x64xi1>, vector<16x64xf32>
    %cst_18 = arith.constant dense<0x7F800000> : vector<64xf32>
    %53 = vector.multi_reduction <minimumf>, %52, %cst_18 [0] : vector<16x64xf32> to vector<64xf32>
    %54 = vector.shape_cast %53 : vector<64xf32> to vector<1x64xf32>
    %c2_i32 = arith.constant 2 : i32
    %55 = vector.broadcast %54 : vector<1x64xf32> to vector<16x64xf32>
    %56 = arith.cmpf ogt, %41, %55 : vector<16x64xf32>
    %cst_19 = arith.constant 0x7F800000 : f32
    %57 = vector.broadcast %cst_19 : f32 to vector<16x64xf32>
    %58 = arith.select %56, %41, %57 : vector<16x64xi1>, vector<16x64xf32>
    %cst_20 = arith.constant dense<0x7F800000> : vector<64xf32>
    %59 = vector.multi_reduction <minimumf>, %58, %cst_20 [0] : vector<16x64xf32> to vector<64xf32>
    %60 = vector.shape_cast %59 : vector<64xf32> to vector<1x64xf32>
    %c3_i32 = arith.constant 3 : i32
    %61 = vector.broadcast %60 : vector<1x64xf32> to vector<16x64xf32>
    %62 = arith.cmpf ogt, %41, %61 : vector<16x64xf32>
    %cst_21 = arith.constant 0x7F800000 : f32
    %63 = vector.broadcast %cst_21 : f32 to vector<16x64xf32>
    %64 = arith.select %62, %41, %63 : vector<16x64xi1>, vector<16x64xf32>
    %cst_22 = arith.constant dense<0x7F800000> : vector<64xf32>
    %65 = vector.multi_reduction <minimumf>, %64, %cst_22 [0] : vector<16x64xf32> to vector<64xf32>
    %66 = vector.shape_cast %65 : vector<64xf32> to vector<1x64xf32>
    %67 = vector.broadcast %66 : vector<1x64xf32> to vector<16x64xf32>
    %68 = arith.cmpf oge, %41, %67 : vector<16x64xf32>
    %cst_23 = arith.constant 0.000000e+00 : f32
    %69 = vector.broadcast %cst_23 : f32 to vector<16x64xf32>
    %70 = arith.select %68, %41, %69 : vector<16x64xi1>, vector<16x64xf32>
    %cst_24 = arith.constant dense<0xFF800000> : vector<64xf32>
    %71 = vector.multi_reduction <maximumf>, %70, %cst_24 [0] : vector<16x64xf32> to vector<64xf32>
    %72 = vector.shape_cast %71 : vector<64xf32> to vector<1x64xf32>
    %73 = vector.broadcast %72 : vector<1x64xf32> to vector<16x64xf32>
    %74 = arith.subf %70, %73 : vector<16x64xf32>
    %75 = math.exp %74 : vector<16x64xf32>
    %cst_25 = arith.constant dense<0.000000e+00> : vector<64xf32>
    %76 = vector.multi_reduction <add>, %75, %cst_25 [0] : vector<16x64xf32> to vector<64xf32>
    %77 = vector.shape_cast %76 : vector<64xf32> to vector<1x64xf32>
    %78 = tpu.reciprocal %77 {approx = true} : vector<1x64xf32> -> vector<1x64xf32>
    %79 = vector.broadcast %78 : vector<1x64xf32> to vector<16x64xf32>
    %80 = arith.mulf %75, %79 : vector<16x64xf32>
    %81 = vector.extract_strided_slice %80 {offsets = [0, 0], sizes = [16, 16], strides = [1, 1]} : vector<16x64xf32> to vector<16x16xf32>
    %82 = vector.extract_strided_slice %9 {offsets = [0, 0], sizes = [16, 16], strides = [1, 1]} : vector<16x64xf32> to vector<16x16xf32>
    %cst_26 = arith.constant dense<0.000000e+00> : vector<16x16xf32>
    %83 = tpu.matmul %81, %82, %cst_26 {dimension_numbers = #tpu.dot_dimension_numbers<[0], [0], [1], [1], [0, 1, 1, 1], [], []>} : vector<16x16xf32>, vector<16x16xf32>, vector<16x16xf32> -> vector<16x16xf32>
    %84 = vector.extract_strided_slice %80 {offsets = [0, 16], sizes = [16, 16], strides = [1, 1]} : vector<16x64xf32> to vector<16x16xf32>
    %85 = vector.extract_strided_slice %9 {offsets = [0, 16], sizes = [16, 16], strides = [1, 1]} : vector<16x64xf32> to vector<16x16xf32>
    %cst_27 = arith.constant dense<0.000000e+00> : vector<16x16xf32>
    %86 = tpu.matmul %84, %85, %cst_27 {dimension_numbers = #tpu.dot_dimension_numbers<[0], [0], [1], [1], [0, 1, 1, 1], [], []>} : vector<16x16xf32>, vector<16x16xf32>, vector<16x16xf32> -> vector<16x16xf32>
    %87 = vector.extract_strided_slice %80 {offsets = [0, 32], sizes = [16, 16], strides = [1, 1]} : vector<16x64xf32> to vector<16x16xf32>
    %88 = vector.extract_strided_slice %9 {offsets = [0, 32], sizes = [16, 16], strides = [1, 1]} : vector<16x64xf32> to vector<16x16xf32>
    %cst_28 = arith.constant dense<0.000000e+00> : vector<16x16xf32>
    %89 = tpu.matmul %87, %88, %cst_28 {dimension_numbers = #tpu.dot_dimension_numbers<[0], [0], [1], [1], [0, 1, 1, 1], [], []>} : vector<16x16xf32>, vector<16x16xf32>, vector<16x16xf32> -> vector<16x16xf32>
    %90 = vector.extract_strided_slice %80 {offsets = [0, 48], sizes = [16, 16], strides = [1, 1]} : vector<16x64xf32> to vector<16x16xf32>
    %91 = vector.extract_strided_slice %9 {offsets = [0, 48], sizes = [16, 16], strides = [1, 1]} : vector<16x64xf32> to vector<16x16xf32>
    %cst_29 = arith.constant dense<0.000000e+00> : vector<16x16xf32>
    %92 = tpu.matmul %90, %91, %cst_29 {dimension_numbers = #tpu.dot_dimension_numbers<[0], [0], [1], [1], [0, 1, 1, 1], [], []>} : vector<16x16xf32>, vector<16x16xf32>, vector<16x16xf32> -> vector<16x16xf32>
    %93 = tpu.concatenate %83, %86, %89, %92 in 1 : vector<16x16xf32>, vector<16x16xf32>, vector<16x16xf32>, vector<16x16xf32> -> vector<16x64xf32>
    %c0_30 = arith.constant 0 : index
    %c0_31 = arith.constant 0 : index
    %c0_32 = arith.constant 0 : index
    %94 = vector.load %arg4[%c0_30, %c0_31, %c0_32] : memref<1x16x64xf32, #tpu.memory_space<vmem>>, vector<1x16x64xf32>
    %95 = vector.shape_cast %94 : vector<1x16x64xf32> to vector<16x64xf32>
    %96 = vector.shape_cast %93 : vector<16x64xf32> to vector<1x16x64xf32>
    tpu.vector_store %arg4[%c0_30, %c0_31, %c0_32], %96 {strides = array<i32>} : memref<1x16x64xf32, #tpu.memory_space<vmem>>, vector<1x16x64xf32>,
    return
  }
  func.func @transform_0(%arg0: i32) -> (i32, i32, i32) {
    %c0_i32 = arith.constant 0 : i32
    %c0_i32_0 = arith.constant 0 : i32
    %c0_i32_1 = arith.constant 0 : i32
    return %arg0, %c0_i32, %c0_i32_0 : i32, i32, i32
  }
  func.func @transform_1(%arg0: i32) -> (i32, i32) {
    %c0_i32 = arith.constant 0 : i32
    %c0_i32_0 = arith.constant 0 : i32
    %c0_i32_1 = arith.constant 0 : i32
    return %c0_i32, %c0_i32_0 : i32, i32
  }
  func.func @transform_2(%arg0: i32) -> (i32, i32) {
    %c0_i32 = arith.constant 0 : i32
    %c0_i32_0 = arith.constant 0 : i32
    %c0_i32_1 = arith.constant 0 : i32
    return %c0_i32, %c0_i32_0 : i32, i32
  }
  func.func @transform_3(%arg0: i32) -> (i32, i32, i32) {
    %c0_i32 = arith.constant 0 : i32
    %c0_i32_0 = arith.constant 0 : i32
    %c0_i32_1 = arith.constant 0 : i32
    return %arg0, %c0_i32, %c0_i32_0 : i32, i32, i32
  }
}

</mosaic_0001>

<bundles_post_ra>
// kernel: tpu_custom_call.1
= control target key start
LH: loop header
LB: loop body
LE: loop exit
PB: predicated region body
PF: predicated region fallthrough
CT: control target
= control target key end

     0   :  { %8 = vsyncpa [#allocation4], 0  ;;  %s2180_s0 = inlined_call_operand.hbm [shape: f32[2,48,64], index: 0, kind: input, shape index: {}]   ;;  %s2181_s1 = inlined_call_operand.hbm [shape: f32[64,192], index: 1, kind: input, shape index: {}]   ;;  %s2182_s2 = inlined_call_operand.vmem [shape: f32[1,192], index: 2, kind: input, shape index: {}]   ;;  %s2183_s3 = inlined_call_operand.hbm [shape: f32[2,16,64], index: 3, kind: output, shape index: {}]  }
   0x1   :  { %10 = vsyncpa [#allocation4 + $0x1], 0 }
   0x2   :  { %11 = vsyncpa [#allocation7], 0 }
   0x3   :  { %12 = vsyncpa [#allocation5], 0 }
   0x4   :  { %14 = vsyncpa [#allocation5 + $0x1], 0  ;;  %s1845_s12 = smov 0   ;;  %s1847_s13 = smov 0  }
   0x5   :  { %s1849_s14 = smov 0   ;;  %s1851_s15 = smov 0  }
   0x6 LB: > { %s1866_s16 = sadd.s32 4294967295, %s1806_s15   ;;  %s1472_s17 = sadd.s32 4294967294, %s1806_s15   ;;  %s1806_s15 = sphi %s1851_s15, %s2205_s15   ;;  %s1802_s14 = sphi %s1849_s14, %s2204_s14   ;;  %s1798_s13 = sphi %s1847_s13, %s2203_s13   ;;  %s1794_s12 = sphi %s1845_s12, %s2202_s12  }
   0x7   : > { %p40_p0 = scmp.ne.s32.totalorder %s1798_s13, %s1794_s12  ;;  %p2184_p1 = scmp.eq.s32.totalorder %s1866_s16, 0 }
   0x8   : > { %p112_p3 = scmp.eq.s32.totalorder %s1472_s17, 1  ;;  %p1473_p5 = scmp.ge.s32.totalorder %s1806_s15, 1 }
   0x9   : > { %p1875_p4 = por %p2184_p1, %p40_p0  ;;  %p119_p7 = scmp.lt.s32.totalorder %s1806_s15, 3 }
   0xa   : > { %p1880_p6 = por %p112_p3, %p40_p0  ;;  %s1808_s21 = smov [#allocation6]  }
   0xb   : > { %s2188_s18 = scalar_select %p1875_p4, 1, 0 }
   0xc   : > { %s2189_s19 = scalar_select %p1880_p6, 1, 0 }
   0xd   : > { %p1885_p8 = pnand %p1473_p5, %p119_p7  ;;  %s131_s22 = sshll.u32 %s1808_s21, 4  ;;  %s132_s22 = int_to_ptr.vmem [resolvable:$true] %s131_s22 }
   0xe   : > { %s1899_s24 = sadd.s32 1, %s1806_s15   ;;  %s27_s25 = sadd.s32 1, %s1802_s14 }
   0xf   : > { %s2190_s20 = scalar_select %p1885_p8, 1, 0 }
  0x10   : > { %p1615_p9 = pneg %p1885_p8  ;;  %s24_s26 = ssub.s32 %s1806_s15, %s1899_s24 }
  0x11   : > { %s1695_s27 = scalar_lea.vmem %s132_s22, 2048  ;;  %p1703_p5 = scmp.lt.s32.totalorder %s132_s22, %s132_s22 }
  0x12   : > { %p1894_p11 = pnand %p1615_p9, %p2184_p1  ;;  %p1696_p13 = scmp.ne.s32.totalorder %s132_s22, %s1695_s27 }
  0x13   : > { %p1704_p7 = scmp.lt.s32.totalorder %s1695_s27, %s1695_s27 }
  0x14   : > { %p1686_p12 = pneg %p1894_p11 }
  0x15   : > { %p1705_p10 = por %p1704_p7, %p1703_p5 }
  0x16   : > { %p1698_p0 = pnand %p1696_p13, %p1686_p12 }
  0x18   : > { %p1699_p3 = pneg %p1698_p0 }
  0x1a   : > { %p1706_p2 = pnand %p1705_p10, %p1699_p3 }
  0x1c   : > { %1709 = shalt.err (!%p1706_p2)
}
  0x1d   : > { %s1809_s28 = smov 256   ;;  %s1810_s29 = smov 16  }
  0x1e   : > { %1618 = dma.hbm_to_vmem [thread:$0]  (!%p1894_p11), %s2181_s1, 2048, %s132_s22, [#allocation7], %s1809_s28, %s1809_s28, %s1810_s29  }
  0x1f   : > { %p25_p9 = scmp.eq.s32.totalorder %s24_s26, 0  ;;  %p34_p12 = scmp.ne.s32.totalorder %s1802_s14, %s1798_s13 }
  0x20   : > { %p35_p10 = scmp.eq.s32.totalorder %s1806_s15, 0  ;;  %p1628_p2 = scmp.lt.s32.totalorder %s1806_s15, 2 }
  0x21   : > { %s1916_s5 = scalar_select %p25_p9, %s1802_s14, %s27_s25  }
  0x22   : > { %p36_p13 = por %p35_p10, %p34_p12  ;;  %p2192_p0 = scmp.eq.s32.totalorder %s1866_s16, 1 }
  0x23   : > { %s148_s7 = sand.u32 1, %s1802_s14   ;;  %s1605_s8 = smul.u32 768, %s1806_s15 }
  0x24   : > { %p1920_p3 = por %p2192_p0, %p34_p12  ;;  %s1604_s9 = smul.u32 48, %s148_s7 }
  0x25   : > { %s1929_s17 = scalar_lea.hbm %s2180_s0, %s1605_s8  ;;  %p1931_p11 = pnand %p1628_p2, %p36_p13 }
  0x26   : > { %s2193_s6 = scalar_select %p1920_p3, 1, 0 }
  0x27   : > { %s152_s22 = scalar_lea.vmem [#allocation3], %s1604_s9  ;;  %s1937_s25 = scalar_lea.sflag [#allocation4], %s148_s7 }
  0x28   : > { %s159_s23 = sshll.u32 %s152_s22, 4  ;;  %s1710_s26 = scalar_lea.hbm %s1929_s17, 768  ;;  %s1935_s23 = int_to_ptr.vmem [resolvable:$true] %s159_s23 }
  0x29   : > { %p1711_p5 = scmp.ne.s32.totalorder %s1929_s17, %s1710_s26  ;;  %p1712_p7 = pneg %p1931_p11 }
  0x2a   : > { %s1715_s29 = scalar_lea.hbm %s2180_s0, 1536  ;;  %p1716_p10 = scmp.lt.s32.totalorder %s1929_s17, %s2180_s0 }
  0x2b   : > { %p1713_p9 = pnand %p1712_p7, %p1711_p5  ;;  %p1717_p2 = scmp.lt.s32.totalorder %s1715_s29, %s1710_s26 }
  0x2d   : > { %p1714_p12 = pneg %p1713_p9  ;;  %p1718_p13 = por %p1717_p2, %p1716_p10 }
  0x2f   : > { %p1719_p0 = pnand %p1718_p13, %p1714_p12 }
  0x31   : > { %1722 = shalt.err (!%p1719_p0)
}
  0x32   : > { %s1723_s7 = scalar_lea.vmem %s1935_s23, 768  ;;  %s1811_s8 = smov [#allocation3]  }
  0x33   : > { %p1724_p1 = scmp.ne.s32.totalorder %s1935_s23, %s1723_s7  ;;  %s1728_s9 = sshll.u32 %s1811_s8, 4  ;;  %s1729_s9 = int_to_ptr.vmem [resolvable:$false] %s1728_s9 }
  0x34   : > { %s1730_s10 = scalar_lea.vmem %s1729_s9, 1536  ;;  %p1731_p9 = scmp.lt.s32.totalorder %s1935_s23, %s1729_s9 }
  0x35   : > { %p1726_p6 = pnand %p1724_p1, %p1712_p7  ;;  %p1732_p3 = scmp.lt.s32.totalorder %s1730_s10, %s1723_s7 }
  0x37   : > { %p1727_p5 = pneg %p1726_p6  ;;  %p1733_p4 = por %p1732_p3, %p1731_p9 }
  0x39   : > { %p1734_p8 = pnand %p1733_p4, %p1727_p5 }
  0x3b   : > { %1737 = shalt.err (!%p1734_p8)
}
  0x3c   : > { %s1812_s11 = smov 128   ;;  %s1813_s22 = smov 8  }
  0x3d   : > { %1622 = dma.hbm_to_vmem [thread:$0]  (!%p1931_p11), %s1929_s17, 768, %s1935_s23, %s1937_s25, %s1812_s11, %s1812_s11, %s1813_s22  }
  0x3e   : > { %p2195_p1 = scmp.ne.s32.totalorder %s2190_s20, 0 }
  0x3f   : > { %s1961_s26 = sand.u32 (!%p2195_p1), 1, %s1798_s13   ;;  %p2196_p4 = scmp.ne.s32.totalorder (!%p2195_p1), %s2188_s18, 0 }
  0x40   : > { %171 = sbr.rel (%p2195_p1) target bundleno = 1583 (0x62f), region = 32  ;;  %s174_s28 = scalar_lea.sflag (!%p2195_p1), [#allocation4], %s1961_s26 }
  0x41   : > { %s1606_s27 = smul.u32 (!%p2195_p1), 48, %s1961_s26 }
  0x43   : > { %s1965_s29 = scalar_lea.vmem (!%p2195_p1), [#allocation3], %s1606_s27 }
  0x45   : > { %1781 = dma.done.wait (%p2196_p4), %s174_s28, 768  }
  0x46   : > { %1783 = vsyncadd (%p2196_p4), %s174_s28, 4294966528  ;;  %p2197_p6 = scmp.eq.s32.totalorder %s1866_s16, 0 }
  0x48   : > { %1785 = dma.done.wait (%p2197_p6), [#allocation7], 2048   ;;  %p2198_p8 = pmov %p2197_p6 }
  0x49   : > { %v1814_v0 = vmov 0.0   ;;  %v225_v1 = vld [vmem:[#allocation6 + $0x78] sm:$0xff]  ;;  %v224_v2 = vld [vmem:[#allocation6 + $0x70] sm:$0xff]  ;;  %v223_v3 = vld [vmem:[#allocation6 + $0x68] sm:$0xff]  ;;  %vm238_vm0 = vcmask 523264   ;;  %v228_v21 = vlaneseq  ;;  %vm384_vm1 = vcmask 130048  }
  0x4a   : > { %1787 = vsyncadd (%p2198_p8), [#allocation7], 4294965248  ;;  %321 = vmatprep.mubr.f32.mxu0 %v1814_v0  ;;  %273 = vmatprep.subr.mxu0 %v225_v1  ;;  %v222_v4 = vld [vmem:[#allocation6 + $0x60] sm:$0xff]  ;;  %v221_v5 = vld [vmem:[#allocation6 + $0x58] sm:$0xff]  ;;  %s1815_s17 = smov 96   ;;  %s1816_s21 = smov 112  }
  0x4b   : > { %274 = vmatpush1.msra.mxu0 %v224_v2  ;;  %v220_v6 = vld [vmem:[#allocation6 + $0x50] sm:$0xff]  ;;  %v219_v7 = vld [vmem:[#allocation6 + $0x48] sm:$0xff]  ;;  %v218_v8 = vld [vmem:[#allocation6 + $0x40] sm:$0xff]  ;;  %v1988_v22 = vshrl.u32 %v228_v21, 7  ;;  %s1817_s23 = smov 80   ;;  %s1818_s25 = smov 64  }
  0x4c   : > { %275 = vmatprep.subr.mxu0 %v223_v3  ;;  %v217_v9 = vld [vmem:[#allocation6 + $0x38] sm:$0xff]  ;;  %v216_v10 = vld [vmem:[#allocation6 + $0x30] sm:$0xff]  ;;  %v215_v11 = vld [vmem:[#allocation6 + $0x28] sm:$0xff]  ;;  %s1819_s30 = smov 16   ;;  %s1820_s4 = smov 32   ;;  %vm739_vm2 = vcmask 261248  }
  0x4d   : > { %276 = vmatpush1.msra.mxu0 %v222_v4  ;;  %v214_v12 = vld [vmem:[#allocation6 + $0x20] sm:$0xff]  ;;  %v213_v13 = vld [vmem:[#allocation6 + $0x18] sm:$0xff]  ;;  %v212_v14 = vld [vmem:[#allocation6 + $0x10] sm:$0xff]  ;;  %v230_v23 = vsub.s32 0, %v1988_v22  ;;  %s1821_s7 = smov 48   ;;  %vm750_vm3 = vcmask 392448  }
  0x4e   : > { %277 = vmatprep.subr.mxu0 %v221_v5  ;;  %v211_v15 = vld [vmem:[#allocation6 + $0x8] sm:$0xff]  ;;  %v210_v16 = vld [vmem:[#allocation6] sm:$0xff]  ;;  %v1994_v24 = vld [vmem:[%s2182_s2] sm:$0x3]  ;;  %vm761_vm4 = vcmask 523648   ;;  %s1479_s8 = sshll.u32 %s1961_s26, 4 }
  0x4f   : > { %278 = vmatpush1.msra.mxu0 %v220_v6  ;;  %v204_v17 = vld [vmem:[%s1965_s29] sm:$0xff]  ;;  %v205_v18 = vld [vmem:[%s1965_s29 + $0x8] sm:$0xff]  ;;  %v206_v19 = vld [vmem:[%s1965_s29 + $0x10] sm:$0xff]  ;;  %v231_v27 = vrot.slane %v1994_v24, %v230_v23  ;;  %v234_v23 = vsub.s32 1, %v1988_v22  ;;  %vm1370_vm15 = vcmask 392192   ;;  %s203_s9 = scalar_lea.vmem [#allocation8], %s1479_s8 }
  0x50   : > { %279 = vmatprep.subr.mxu0 %v219_v7  ;;  %v207_v20 = vld [vmem:[%s1965_s29 + $0x18] sm:$0xff]  ;;  %v208_v58 = vld [vmem:[%s1965_s29 + $0x20] sm:$0xff]  ;;  %v209_v59 = vld [vmem:[%s1965_s29 + $0x28] sm:$0xff]  ;;  %s1389_s10 = sshll.u32 %s203_s9, 4  ;;  %s1515_s11 = sshll.u32 %s1866_s16, 8  ;;  %s2128_s10 = int_to_ptr.vmem [resolvable:$true] %s1389_s10 }
  0x51   : > { %280 = vmatpush1.msra.mxu0 %v218_v8  ;;  %s2135_s28 = scalar_lea.hbm %s2183_s3, %s1515_s11  ;;  %s1376_s16 = scalar_lea.sflag [#allocation5], %s1961_s26 }
  0x52   : > { %281 = vmatprep.subr.mxu0 %v217_v9  ;;  %s1738_s29 = scalar_lea.vmem %s2128_s10, 256  ;;  %p2199_p11 = scmp.ne.s32.totalorder %s2193_s6, 0 }
  0x53   : > { %282 = vmatpush1.msra.mxu0 %v216_v10  ;;  %p1739_p3 = scmp.ne.s32.totalorder %s2128_s10, %s1738_s29  ;;  %s1822_s18 = smov [#allocation8]  }
  0x54   : > { %283 = vmatprep.subr.mxu0 %v215_v11  ;;  %s1742_s20 = sshll.u32 %s1822_s18, 4  ;;  %s1743_s20 = int_to_ptr.vmem [resolvable:$false] %s1742_s20 }
  0x55   : > { %284 = vmatpush1.msra.mxu0 %v214_v12  ;;  %p1740_p7 = pnand %p1739_p3, %p2199_p11  ;;  %p1745_p10 = scmp.lt.s32.totalorder %s2128_s10, %s1743_s20 }
  0x56   : > { %285 = vmatprep.subr.mxu0 %v213_v13 }
  0x57   : > { %286 = vmatpush1.msra.mxu0 %v212_v14  ;;  %p1741_p12 = pneg %p1740_p7 }
  0x58   : > { %287 = vmatprep.subr.mxu0 %v211_v15 }
  0x59   : > { %288 = vmatpush1.msra.mxu0 %v210_v16 }
  0x5a   : > { %1480 = vmatmul.mubr.msk.f32.vlgmr.msra.gmra.mxu0 %vm238_vm0, %v204_v17 }
  0x5b   : > { %326 = vmatprep.mubr.f32.mxu0 %v1814_v0 }
  0x5e   : > { %1481 = vmatmul.mubr.msk.f32.gmra.mxu0 %vm238_vm0, %v205_v18 }
  0x5f   : > { %331 = vmatprep.mubr.f32.mxu0 %v1814_v0 }
  0x62   : > { %1482 = vmatmul.mubr.msk.f32.gmra.mxu0 %vm238_vm0, %v206_v19 }
  0x63   : > { %336 = vmatprep.mubr.f32.mxu0 %v1814_v0 }
  0x66   : > { %1483 = vmatmul.mubr.msk.f32.gmra.mxu0 %vm238_vm0, %v207_v20 }
  0x67   : > { %341 = vmatprep.mubr.f32.mxu0 %v1814_v0 }
  0x6a   : > { %1484 = vmatmul.mubr.msk.f32.gmra.mxu0 %vm238_vm0, %v208_v58 }
  0x6b   : > { %346 = vmatprep.mubr.f32.mxu0 %v1814_v0 }
  0x6e   : > { %1485 = vmatmul.mubr.msk.f32.gmra.mxu0 %vm238_vm0, %v209_v59 }
 0x11a   : > { %v323_v25 = vpop.f32.mrf.mxu0 }
 0x11b   : > { %v324_v31 = vadd.f32 %v323_v25, %v231_v27 }
 0x11c   : > { %v325_v26 = vpop.f32.mrf.mxu0 }
 0x11e   : > { %v328_v28 = vpop.f32.mrf.mxu0 }
 0x11f   : > { %v329_v29 = vadd.f32 %v328_v28, %v231_v27 }
 0x120   : > { %v330_v30 = vpop.f32.mrf.mxu0 }
 0x121   : > { %1548 = vmatprep.subr.msk.mxu1 %vm384_vm1, %v329_v29 }
 0x122   : > { %v333_v32 = vpop.f32.mrf.mxu0  ;;  %1549 = vmatpush3.xpose.msk.msra.mxu1 %vm384_vm1, %v329_v29 }
 0x123   : > { %v334_v33 = vadd.f32 %v333_v32, %v231_v27  ;;  %1550 = vmatprep.subr.msk.mxu1 %vm384_vm1, %v324_v31 }
 0x124   : > { %v335_v34 = vpop.f32.mrf.mxu0 }
 0x125   : > { %372 = vrot.lane.b32.xlu1 %v334_v33, %s1815_s17  ;;  %368 = vrot.lane.b32.xlu0 %v334_v33, %s1816_s21 }
 0x126   : > { %v338_v35 = vpop.f32.mrf.mxu0  ;;  %1551 = vmatpush3.xpose.msk.msra.mxu1 %vm384_vm1, %v324_v31 }
 0x127   : > { %v339_v36 = vadd.f32 %v338_v35, %v231_v27  ;;  %v235_v27 = vrot.slane %v1994_v24, %v234_v23 }
 0x128   : > { %v340_v37 = vpop.f32.mrf.mxu0 }
 0x129   : > { %374 = vrot.lane.b32.xlu1 %v339_v36, %s1815_s17  ;;  %370 = vrot.lane.b32.xlu0 %v339_v36, %s1816_s21 }
 0x12a   : > { %v343_v4 = vpop.f32.mrf.mxu0 }
 0x12c   : > { %v344_v25 = vpop.f32.mrf.mxu0 }
 0x12d   : > { %378 = vrot.lane.b32.xlu1 %v339_v36, %s1817_s23  ;;  %376 = vrot.lane.b32.xlu0 %v334_v33, %s1817_s23  ;;  %v2064_v34 = vadd.f32 %v344_v25, %v235_v27 }
 0x12e   : > { %v348_v28 = vpop.f32.mrf.mxu0 }
 0x130   : > { %v349_v30 = vpop.f32.mrf.mxu0 }
 0x131   : > { %380 = vrot.lane.b32.xlu1 %v334_v33, %s1818_s25  ;;  %356 = vrot.lane.b32.xlu0 %v329_v29, %s1816_s21 }
 0x135   : > { %382 = vrot.lane.b32.xlu0 %v339_v36, %s1818_s25  ;;  %354 = vrot.lane.b32.xlu1 %v324_v31, %s1816_s21 }
 0x139   : > { %360 = vrot.lane.b32.xlu0 %v329_v29, %s1815_s17 }
 0x197   : > { %v373_v38 = vpop.permute.xlu1 %372  ;;  %v369_v39 = vpop.permute.xlu0 %368 }
 0x198   : > { %468 = vrot.lane.b32.xlu1 %v369_v39, %s1818_s25 }
 0x19b   : > { %v375_v40 = vpop.permute.xlu1 %374  ;;  %v371_v41 = vpop.permute.xlu0 %370 }
 0x19c   : > { %470 = vrot.lane.b32.xlu0 %v371_v41, %s1818_s25  ;;  %358 = vrot.lane.b32.xlu1 %v324_v31, %s1815_s17 }
 0x19f   : > { %v379_v42 = vpop.permute.xlu1 %378  ;;  %v377_v43 = vpop.permute.xlu0 %376 }
 0x1a0   : > { %364 = vrot.lane.b32.xlu0 %v329_v29, %s1817_s23  ;;  %555 = vrot.lane.b32.xlu1 %v373_v38, %s1818_s25 }
 0x1a3   : > { %v381_v44 = vpop.permute.xlu1 %380  ;;  %v357_v45 = vpop.permute.xlu0 %356 }
 0x1a4   : > { %1552 = vmatprep.mubr.msk.f32.mxu1 %vm384_vm1, %v381_v44  ;;  %557 = vrot.lane.b32.xlu0 %v375_v40, %s1818_s25 }
 0x1a5   : > { %362 = vrot.lane.b32.xlu1 %v324_v31, %s1817_s23  ;;  %1555 = vmatprep.subr.msk.mxu1 %vm384_vm1, %v357_v45  ;;  %v2058_v31 = vadd.f32 %v349_v30, %v235_v27 }
 0x1a7   : > { %v383_v46 = vpop.permute.xlu0 %382  ;;  %v355_v47 = vpop.permute.xlu1 %354 }
 0x1a8   : > { %642 = vrot.lane.b32.xlu0 %v377_v43, %s1818_s25  ;;  %1553 = vmatmul.mubr.msk.f32.vlgmr.msra.gmra.mxu1 %vm384_vm1, %v383_v46 }
 0x1a9   : > { %644 = vrot.lane.b32.xlu1 %v379_v42, %s1818_s25  ;;  %1556 = vmatpush3.xpose.msk.msra.mxu1 %vm384_vm1, %v357_v45 }
 0x1aa   : > { %1557 = vmatprep.subr.msk.mxu1 %vm384_vm1, %v355_v47 }
 0x1ab   : > { %v361_v48 = vpop.permute.xlu0 %360 }
 0x1ad   : > { %1558 = vmatpush3.xpose.msk.msra.mxu1 %vm384_vm1, %v355_v47 }
 0x1ae   : > { %1562 = vmatprep.subr.msk.mxu1 %vm384_vm1, %v361_v48 }
 0x20a   : > { %v469_v49 = vpop.permute.xlu1 %468 }
 0x20b   : > { %1559 = vmatprep.mubr.msk.f32.mxu1 %vm384_vm1, %v469_v49 }
 0x20e   : > { %v471_v50 = vpop.permute.xlu0 %470  ;;  %v359_v51 = vpop.permute.xlu1 %358 }
 0x20f   : > { %1560 = vmatmul.mubr.msk.f32.vlgmr.msra.gmra.mxu1 %vm384_vm1, %v471_v50 }
 0x210   : > { %1563 = vmatpush3.xpose.msk.msra.mxu1 %vm384_vm1, %v361_v48 }
 0x211   : > { %1564 = vmatprep.subr.msk.mxu1 %vm384_vm1, %v359_v51 }
 0x212   : > { %v365_v52 = vpop.permute.xlu0 %364  ;;  %v556_v53 = vpop.permute.xlu1 %555 }
 0x213   : > { %1566 = vmatprep.mubr.msk.f32.mxu1 %vm384_vm1, %v556_v53 }
 0x214   : > { %1565 = vmatpush3.xpose.msk.msra.mxu1 %vm384_vm1, %v359_v51 }
 0x215   : > { %1569 = vmatprep.subr.msk.mxu1 %vm384_vm1, %v365_v52 }
 0x216   : > { %v558_v54 = vpop.permute.xlu0 %557 }
 0x217   : > { %v363_v55 = vpop.permute.xlu1 %362  ;;  %1567 = vmatmul.mubr.msk.f32.vlgmr.msra.gmra.mxu1 %vm384_vm1, %v558_v54 }
 0x218   : > { %1570 = vmatpush3.xpose.msk.msra.mxu1 %vm384_vm1, %v365_v52 }
 0x219   : > { %1571 = vmatprep.subr.msk.mxu1 %vm384_vm1, %v363_v55 }
 0x21a   : > { %v643_v56 = vpop.permute.xlu0 %642 }
 0x21b   : > { %1573 = vmatprep.mubr.msk.f32.mxu1 %vm384_vm1, %v643_v56  ;;  %v645_v57 = vpop.permute.xlu1 %644 }
 0x21c   : > { %1572 = vmatpush3.xpose.msk.msra.mxu1 %vm384_vm1, %v363_v55 }
 0x21d   : > { %1576 = vmatprep.subr.mxu1 %v2058_v31 }
 0x21f   : > { %1574 = vmatmul.mubr.msk.f32.vlgmr.msra.gmra.mxu1 %vm384_vm1, %v645_v57 }
 0x220   : > { %1577 = vmatpush3.msra.mxu1 %v2058_v31 }
 0x221   : > { %1578 = vmatprep.subr.mxu1 %v2064_v34 }
 0x222   : > { %1579 = vmatpush3.msra.mxu1 %v2064_v34 }
 0x268   : > { %v1554_v60 = vpop.f32.mrf.mxu1 }
 0x269   : > { %730 = vst.msk [vmem:[#allocation2 + $0x8] sm:$0xff] %vm384_vm1, %v1554_v60 }
 0x26a   : > { %v459_v61 = vpop.f32.mrf.mxu1 }
 0x26b   : > { %729 = vst.msk [vmem:[#allocation2] sm:$0xff] %vm384_vm1, %v459_v61 }
 0x2cf   : > { %v1561_v62 = vpop.f32.mrf.mxu1 }
 0x2d0   : > { %735 = vrot.lane.b32.xlu1 %v1561_v62, %s1819_s30 }
 0x2d1   : > { %v546_v63 = vpop.f32.mrf.mxu1 }
 0x2d2   : > { %733 = vrot.lane.b32.xlu0 %v546_v63, %s1819_s30 }
 0x2d7   : > { %v1568_v1 = vpop.f32.mrf.mxu1 }
 0x2d8   : > { %746 = vrot.lane.b32.xlu1 %v1568_v1, %s1820_s4 }
 0x2d9   : > { %v633_v0 = vpop.f32.mrf.mxu1 }
 0x2da   : > { %744 = vrot.lane.b32.xlu0 %v633_v0, %s1820_s4 }
 0x2df   : > { %v1575_v2 = vpop.f32.mrf.mxu1 }
 0x2e0   : > { %757 = vrot.lane.b32.xlu1 %v1575_v2, %s1821_s7 }
 0x2e1   : > { %v720_v3 = vpop.f32.mrf.mxu1 }
 0x2e2   : > { %755 = vrot.lane.b32.xlu0 %v720_v3, %s1821_s7 }
 0x342   : > { %v736_v5 = vpop.permute.xlu1 %735 }
 0x343   : > { %741 = vst.msk [vmem:[#allocation2 + $0x8] sm:$0xff] %vm739_vm2, %v736_v5 }
 0x344   : > { %v734_v6 = vpop.permute.xlu0 %733 }
 0x345   : > { %740 = vst.msk [vmem:[#allocation2] sm:$0xff] %vm739_vm2, %v734_v6  ;;  %vm1367_vm2 = vcmask 261120  }
 0x34a   : > { %v747_v7 = vpop.permute.xlu1 %746 }
 0x34b   : > { %752 = vst.msk [vmem:[#allocation2 + $0x8] sm:$0xff] %vm750_vm3, %v747_v7 }
 0x34c   : > { %v745_v8 = vpop.permute.xlu0 %744 }
 0x34d   : > { %751 = vst.msk [vmem:[#allocation2] sm:$0xff] %vm750_vm3, %v745_v8 }
 0x352   : > { %v758_v9 = vpop.permute.xlu1 %757 }
 0x353   : > { %763 = vst.msk [vmem:[#allocation2 + $0x8] sm:$0xff] %vm761_vm4, %v758_v9 }
 0x354   : > { %v756_v10 = vpop.permute.xlu0 %755 }
 0x355   : > { %762 = vst.msk [vmem:[#allocation2] sm:$0xff] %vm761_vm4, %v756_v10 }
 0x35a   : > { %v2046_v11 = vld [vmem:[#allocation2 + $0x8] sm:$0xff] }
 0x35b   : > { %vm767_vm5 = vcmp.gt.f32.partialorder %v2046_v11, -inf }
 0x35c   : > { %v769_v12 = vsel %vm767_vm5, %v2046_v11, inf  ;;  %v2050_v13 = vld [vmem:[#allocation2] sm:$0xff] }
 0x35d   : > { %vm766_vm6 = vcmp.gt.f32.partialorder %v2050_v13, -inf  ;;  %v771_v15 = vsel %vm238_vm0, %v769_v12, inf }
 0x35e   : > { %v768_v14 = vsel %vm766_vm6, %v2050_v13, inf }
 0x35f   : > { %v770_v16 = vsel %vm238_vm0, %v768_v14, inf }
 0x360   : > { %v772_v17 = vmin.f32 %v770_v16, %v771_v15 }
 0x362   : > { %v773_v18 = vrot.slane %v772_v17, 4 }
 0x364   : > { %v774_v19 = vmin.f32 %v772_v17, %v773_v18 }
 0x366   : > { %v775_v20 = vrot.slane %v774_v19, 2 }
 0x368   : > { %v776_v21 = vmin.f32 %v774_v19, %v775_v20 }
 0x36a   : > { %v777_v26 = vrot.slane %v776_v21, 1 }
 0x36c   : > { %v778_v29 = vmin.f32 %v776_v21, %v777_v26 }
 0x36e   : > { %vm779_vm7 = vcmp.gt.f32.partialorder %v2050_v13, %v778_v29  ;;  %vm780_vm8 = vcmp.gt.f32.partialorder %v2046_v11, %v778_v29 }
 0x36f   : > { %v781_v32 = vsel %vm779_vm7, %v2050_v13, inf  ;;  %v782_v33 = vsel %vm780_vm8, %v2046_v11, inf }
 0x370   : > { %v783_v22 = vsel %vm238_vm0, %v781_v32, inf  ;;  %v784_v24 = vsel %vm238_vm0, %v782_v33, inf }
 0x371   : > { %v785_v35 = vmin.f32 %v783_v22, %v784_v24 }
 0x373   : > { %v786_v36 = vrot.slane %v785_v35, 4 }
 0x375   : > { %v787_v37 = vmin.f32 %v785_v35, %v786_v36 }
 0x377   : > { %v788_v38 = vrot.slane %v787_v37, 2 }
 0x379   : > { %v789_v39 = vmin.f32 %v787_v37, %v788_v38 }
 0x37b   : > { %v790_v40 = vrot.slane %v789_v39, 1 }
 0x37d   : > { %v791_v41 = vmin.f32 %v789_v39, %v790_v40 }
 0x37f   : > { %vm792_vm9 = vcmp.gt.f32.partialorder %v2050_v13, %v791_v41  ;;  %vm793_vm10 = vcmp.gt.f32.partialorder %v2046_v11, %v791_v41 }
 0x380   : > { %v794_v42 = vsel %vm792_vm9, %v2050_v13, inf  ;;  %v795_v43 = vsel %vm793_vm10, %v2046_v11, inf }
 0x381   : > { %v796_v44 = vsel %vm238_vm0, %v794_v42, inf  ;;  %v797_v45 = vsel %vm238_vm0, %v795_v43, inf }
 0x382   : > { %v798_v46 = vmin.f32 %v796_v44, %v797_v45 }
 0x384   : > { %v799_v47 = vrot.slane %v798_v46, 4 }
 0x386   : > { %v800_v48 = vmin.f32 %v798_v46, %v799_v47 }
 0x388   : > { %v801_v49 = vrot.slane %v800_v48, 2 }
 0x38a   : > { %v802_v50 = vmin.f32 %v800_v48, %v801_v49 }
 0x38c   : > { %v803_v51 = vrot.slane %v802_v50, 1 }
 0x38e   : > { %v804_v52 = vmin.f32 %v802_v50, %v803_v51 }
 0x390   : > { %vm805_vm11 = vcmp.gt.f32.partialorder %v2050_v13, %v804_v52  ;;  %vm806_vm12 = vcmp.gt.f32.partialorder %v2046_v11, %v804_v52 }
 0x391   : > { %v807_v53 = vsel %vm805_vm11, %v2050_v13, inf  ;;  %v808_v54 = vsel %vm806_vm12, %v2046_v11, inf }
 0x392   : > { %v809_v55 = vsel %vm238_vm0, %v807_v53, inf  ;;  %v810_v56 = vsel %vm238_vm0, %v808_v54, inf }
 0x393   : > { %v811_v57 = vmin.f32 %v809_v55, %v810_v56 }
 0x395   : > { %v812_v58 = vrot.slane %v811_v57, 4 }
 0x397   : > { %v813_v59 = vmin.f32 %v811_v57, %v812_v58 }
 0x399   : > { %v814_v60 = vrot.slane %v813_v59, 2 }
 0x39b   : > { %v815_v61 = vmin.f32 %v813_v59, %v814_v60 }
 0x39d   : > { %v816_v62 = vrot.slane %v815_v61, 1 }
 0x39f   : > { %v817_v63 = vmin.f32 %v815_v61, %v816_v62 }
 0x3a1   : > { %vm818_vm13 = vcmp.ge.f32.partialorder %v2050_v13, %v817_v63  ;;  %vm819_vm14 = vcmp.ge.f32.partialorder %v2046_v11, %v817_v63 }
 0x3a2   : > { %v820_v1 = vsel %vm818_vm13, %v2050_v13, 0.0  ;;  %v821_v0 = vsel %vm819_vm14, %v2046_v11, 0.0 }
 0x3a3   : > { %v822_v2 = vsel %vm238_vm0, %v820_v1, -inf  ;;  %v823_v3 = vsel %vm238_vm0, %v821_v0, -inf }
 0x3a4   : > { %v824_v4 = vmax.f32 %v822_v2, %v823_v3 }
 0x3a6   : > { %v825_v5 = vrot.slane %v824_v4, 4 }
 0x3a8   : > { %v826_v6 = vmax.f32 %v824_v4, %v825_v5 }
 0x3aa   : > { %v827_v7 = vrot.slane %v826_v6, 2 }
 0x3ac   : > { %v828_v8 = vmax.f32 %v826_v6, %v827_v7 }
 0x3ae   : > { %v829_v9 = vrot.slane %v828_v8, 1 }
 0x3b0   : > { %v830_v10 = vmax.f32 %v828_v8, %v829_v9 }
 0x3b2   : > { %v831_v12 = vsub.f32 %v820_v1, %v830_v10  ;;  %v832_v14 = vsub.f32 %v821_v0, %v830_v10 }
 0x3b4   : > { %v833_v15 = vmul.f32 1.442695, %v831_v12  ;;  %v835_v16 = vmul.f32 1.442695, %v832_v14 }
 0x3b6   : > { %1678 = vpow2.f32 %v833_v15 }
 0x3b7   : > { %1680 = vpow2.f32 %v835_v16 }
 0x3c3   : > { %v1679_v13 = vpop.eup %1678 }
 0x3c4   : > { %v1681_v17 = vpop.eup %1680  ;;  %v837_v11 = vsel %vm238_vm0, %v1679_v13, 0.0 }
 0x3c5   : > { %v838_v18 = vsel %vm238_vm0, %v1681_v17, 0.0 }
 0x3c6   : > { %v839_v19 = vadd.f32 %v838_v18, %v837_v11 }
 0x3c8   : > { %v840_v20 = vrot.slane %v839_v19, 4 }
 0x3ca   : > { %v841_v21 = vadd.f32 %v840_v20, %v839_v19 }
 0x3cc   : > { %v842_v23 = vrot.slane %v841_v21, 2 }
 0x3ce   : > { %v843_v25 = vadd.f32 %v842_v23, %v841_v21 }
 0x3d0   : > { %v844_v26 = vrot.slane %v843_v25, 1 }
 0x3d2   : > { %v845_v27 = vadd.f32 %v844_v26, %v843_v25 }
 0x3d4   : > { %1682 = vrcp.f32 %v845_v27 }
 0x3e1   : > { %v1683_v28 = vpop.eup %1682 }
 0x3e2   : > { %v848_v29 = vmul.f32 %v1683_v28, %v1681_v17  ;;  %v847_v30 = vmul.f32 %v1683_v28, %v1679_v13 }
 0x3e4   : > { %966 = vrot.lane.b32.xlu1 %v848_v29, %s1816_s21  ;;  %964 = vrot.lane.b32.xlu0 %v847_v30, %s1816_s21 }
 0x3e8   : > { %1216 = vrot.lane.b32.xlu1 %v847_v30, %s1817_s23  ;;  %1091 = vrot.lane.b32.xlu0 %v847_v30, %s1815_s17 }
 0x3ec   : > { %1218 = vrot.lane.b32.xlu1 %v848_v29, %s1817_s23  ;;  %1093 = vrot.lane.b32.xlu0 %v848_v29, %s1815_s17 }
 0x3f0   : > { %1006 = vrot.lane.b32.xlu0 %v2058_v31, %s1816_s21  ;;  %1004 = vrot.lane.b32.xlu1 %v2064_v34, %s1816_s21 }
 0x3f4   : > { %1131 = vrot.lane.b32.xlu0 %v2058_v31, %s1815_s17  ;;  %1256 = vrot.lane.b32.xlu1 %v2058_v31, %s1817_s23 }
 0x3f8   : > { %1129 = vrot.lane.b32.xlu0 %v2064_v34, %s1815_s17  ;;  %1254 = vrot.lane.b32.xlu1 %v2064_v34, %s1817_s23  ;;  %s1744_s17 = scalar_lea.vmem %s1743_s20, 512 }
 0x3f9   : > { %p1746_p2 = scmp.lt.s32.totalorder %s1744_s17, %s1738_s29 }
 0x3fb   : > { %p1747_p13 = por %p1746_p2, %p1745_p10 }
 0x3fd   : > { %p1748_p0 = pnand %p1747_p13, %p1741_p12 }
 0x416   : > { %849 = vxpose.xlu0.b32.start [1/2] (short) (narrow) %v847_v30, 16 }
 0x41a   : > { %850 = vxpose.xlu0.b32.end [2/2] (short) (narrow) %v848_v29, 16 }
 0x456   : > { %v967_v32 = vpop.permute.xlu1 %966  ;;  %v965_v33 = vpop.permute.xlu0 %964 }
 0x457   : > { %970 = vxpose.xlu1.b32.start [1/2] (short) (narrow) %v965_v33, 16 }
 0x45a   : > { %v1217_v22 = vpop.permute.xlu1 %1216  ;;  %v1092_v24 = vpop.permute.xlu0 %1091 }
 0x45b   : > { %971 = vxpose.xlu1.b32.end [2/2] (short) (narrow) %v967_v32, 16  ;;  %1097 = vxpose.xlu0.b32.start [1/2] (short) (narrow) %v1092_v24, 16 }
 0x45e   : > { %v1219_v35 = vpop.permute.xlu1 %1218  ;;  %v1094_v36 = vpop.permute.xlu0 %1093 }
 0x45f   : > { %1098 = vxpose.xlu0.b32.end [2/2] (short) (narrow) %v1094_v36, 16 }
 0x462   : > { %v1007_v37 = vpop.permute.xlu0 %1006  ;;  %v1005_v31 = vpop.permute.xlu1 %1004 }
 0x463   : > { %1222 = vxpose.xlu0.b32.start [1/2] (short) (narrow) %v1217_v22, 16  ;;  %1583 = vmatprep.subr.mxu0 %v1007_v37 }
 0x464   : > { %1584 = vmatpush3.msra.mxu0 %v1007_v37 }
 0x465   : > { %1585 = vmatprep.subr.mxu0 %v1005_v31 }
 0x466   : > { %v1132_v38 = vpop.permute.xlu0 %1131  ;;  %1586 = vmatpush3.msra.mxu0 %v1005_v31  ;;  %v1257_v34 = vpop.permute.xlu1 %1256 }
 0x467   : > { %1223 = vxpose.xlu0.b32.end [2/2] (short) (narrow) %v1219_v35, 16  ;;  %1590 = vmatprep.subr.mxu1 %v1132_v38 }
 0x468   : > { %1597 = vmatprep.subr.mxu0 %v1257_v34 }
 0x46a   : > { %v1130_v39 = vpop.permute.xlu0 %1129  ;;  %v1255_v42 = vpop.permute.xlu1 %1254 }
 0x492   : > { %v865_v40 = vpop.trf.xlu0 }
 0x493   : > { %1580 = vmatprep.mubr.msk.f32.mxu1 %vm384_vm1, %v865_v40 }
 0x496   : > { %v866_v41 = vpop.trf.xlu0 }
 0x497   : > { %1581 = vmatmul.mubr.msk.f32.vlgmr.msra.gmra.mxu1 %vm384_vm1, %v866_v41 }
 0x498   : > { %1591 = vmatpush3.msra.mxu1 %v1132_v38 }
 0x499   : > { %1592 = vmatprep.subr.mxu1 %v1130_v39 }
 0x49a   : > { %1593 = vmatpush3.msra.mxu1 %v1130_v39 }
 0x4d3   : > { %v986_v43 = vpop.trf.xlu1 }
 0x4d4   : > { %1587 = vmatprep.mubr.msk.f32.mxu0 %vm384_vm1, %v986_v43 }
 0x4d7   : > { %v987_v44 = vpop.trf.xlu1  ;;  %v1113_v45 = vpop.trf.xlu0 }
 0x4d8   : > { %1588 = vmatmul.mubr.msk.f32.vlgmr.msra.gmra.mxu0 %vm384_vm1, %v987_v44  ;;  %1594 = vmatprep.mubr.msk.f32.mxu1 %vm384_vm1, %v1113_v45 }
 0x4d9   : > { %1598 = vmatpush3.msra.mxu0 %v1257_v34 }
 0x4da   : > { %1599 = vmatprep.subr.mxu0 %v1255_v42 }
 0x4db   : > { %1600 = vmatpush3.msra.mxu0 %v1255_v42  ;;  %v1114_v46 = vpop.trf.xlu0 }
 0x4dc   : > { %1595 = vmatmul.mubr.msk.f32.vlgmr.msra.gmra.mxu1 %vm384_vm1, %v1114_v46 }
 0x4df   : > { %v1238_v47 = vpop.trf.xlu0 }
 0x4e0   : > { %1601 = vmatprep.mubr.msk.f32.mxu0 %vm384_vm1, %v1238_v47 }
 0x4e3   : > { %v1239_v48 = vpop.trf.xlu0 }
 0x4e4   : > { %1602 = vmatmul.mubr.msk.f32.vlgmr.msra.gmra.mxu0 %vm384_vm1, %v1239_v48 }
 0x557   : > { %v1582_v49 = vpop.f32.mrf.mxu1 }
 0x559   : > { %v953_v51 = vpop.f32.mrf.mxu1 }
 0x598   : > { %v1589_v50 = vpop.f32.mrf.mxu0 }
 0x599   : > { %1345 = vrot.lane.b32.xlu0 %v1589_v50, %s1819_s30 }
 0x59a   : > { %v1082_v53 = vpop.f32.mrf.mxu0 }
 0x59c   : > { %v1596_v52 = vpop.f32.mrf.mxu1 }
 0x59d   : > { %1353 = vrot.lane.b32.xlu1 %v1596_v52, %s1820_s4 }
 0x59e   : > { %v1207_v54 = vpop.f32.mrf.mxu1 }
 0x5a1   : > { %1343 = vrot.lane.b32.xlu1 %v1082_v53, %s1819_s30 }
 0x5a4   : > { %v1603_v55 = vpop.f32.mrf.mxu0 }
 0x5a5   : > { %1351 = vrot.lane.b32.xlu1 %v1207_v54, %s1820_s4 }
 0x5a6   : > { %v1332_v56 = vpop.f32.mrf.mxu0 }
 0x5a9   : > { %1359 = vrot.lane.b32.xlu1 %v1332_v56, %s1821_s7 }
 0x5ad   : > { %1361 = vrot.lane.b32.xlu1 %v1603_v55, %s1821_s7 }
 0x60b   : > { %v1346_v61 = vpop.permute.xlu0 %1345 }
 0x60c   : > { %v1366_v0 = vsel %vm384_vm1, %v1582_v49, %v1346_v61 }
 0x60f   : > { %v1354_v57 = vpop.permute.xlu1 %1353 }
 0x610   : > { %v1369_v2 = vsel %vm1367_vm2, %v1366_v0, %v1354_v57 }
 0x613   : > { %v1344_v58 = vpop.permute.xlu1 %1343 }
 0x614   : > { %v1365_v60 = vsel %vm384_vm1, %v953_v51, %v1344_v58 }
 0x617   : > { %v1352_v59 = vpop.permute.xlu1 %1351 }
 0x618   : > { %v1368_v62 = vsel %vm1367_vm2, %v1365_v60, %v1352_v59 }
 0x61b   : > { %v1360_v63 = vpop.permute.xlu1 %1359 }
 0x61c   : > { %v1371_v1 = vsel %vm1370_vm15, %v1368_v62, %v1360_v63 }
 0x61d   : > { %1373 = vst.msk [vmem:[%s203_s9] sm:$0xff] %vm238_vm0, %v1371_v1 }
 0x61f   : > { %v1362_v3 = vpop.permute.xlu1 %1361 }
 0x620   : > { %v1372_v4 = vsel %vm1370_vm15, %v1369_v2, %v1362_v3 }
 0x621   : > { %1374 = vst.msk [vmem:[%s203_s9 + $0x8] sm:$0xff] %vm238_vm0, %v1372_v4 }
 0x622   : > { %1751 = shalt.err (!%p1748_p0)
}
 0x623   : > { %s1752_s21 = scalar_lea.hbm %s2135_s28, 256  ;;  %s1756_s30 = scalar_lea.hbm %s2183_s3, 512 }
 0x624   : > { %p1753_p5 = scmp.ne.s32.totalorder %s2135_s28, %s1752_s21  ;;  %p1757_p4 = scmp.lt.s32.totalorder %s2135_s28, %s2183_s3 }
 0x625   : > { %p1758_p6 = scmp.lt.s32.totalorder %s1756_s30, %s1752_s21 }
 0x626   : > { %p1754_p9 = pnand %p1753_p5, %p2199_p11 }
 0x627   : > { %p1759_p8 = por %p1758_p6, %p1757_p4 }
 0x628   : > { %p1755_p1 = pneg %p1754_p9 }
 0x62a   : > { %p1760_p3 = pnand %p1759_p8, %p1755_p1 }
 0x62c   : > { %1763 = shalt.err (!%p1760_p3)
}
 0x62d   : > { %s1823_s8 = smov 128   ;;  %s1824_s9 = smov 8  }
 0x62e   : > { %1613 = dma.vmem_to_hbm [thread:$0]  (%p2199_p11), %s2128_s10, 256, %s2135_s28, %s1376_s16, %s1823_s8, %s1823_s8, %s1824_s9  }
 0x62f PF: > { %s1404_s11 = sand.u32 1, %s1794_s12   ;;  %p2200_p7 = scmp.ne.s32.totalorder %s2189_s19, 0 }
 0x630   : > { %p2201_p12 = scmp.ge.s32.totalorder %s1806_s15, 2  ;;  %s1405_s22 = scalar_lea.sflag [#allocation5], %s1404_s11 }
 0x632   : > { %p1624_p10 = pnand %p2201_p12, %p2200_p7 }
 0x634   : > { %p1625_p2 = pneg %p1624_p10 }
 0x636   : > { %1789 = dma.done.wait (%p1625_p2), %s1405_s22, 256  }
 0x637   : > { %1791 = vsyncadd (%p1625_p2), %s1405_s22, 4294967040  ;;  %p17_p13 = scmp.ge.s32.totalorder %s1899_s24, 4   ;;  %s2202_s12 = smov %s1798_s13 }
 0x638   : > { %s2203_s13 = smov %s1802_s14  ;;  %s2204_s14 = smov %s1916_s5 }
 0x639   : > { %s2205_s15 = smov %s1899_s24  ;;  %19 = sbr.rel (!%p17_p13) target bundleno = 6 (0x6), region = 81 }
 0x63e   :  { %1410 = vsyncpa [#allocation4], 1 }
 0x63f   :  { %1412 = vsyncpa [#allocation4 + $0x1], 1 }
 0x640   :  { %1413 = vsyncpa [#allocation7], 1 }
 0x641   :  { %1414 = vsyncpa [#allocation5], 1 }
 0x642   :  { %1416 = vsyncpa [#allocation5 + $0x1], 1 }

</bundles_post_ra>
